<compile_context>
chip_gen: v7x
topology: tpu7x:2x2x1
jax: 0.10.0
libtpu: 0.0.40
codegen_flags: <defaults>
</compile_context>

<pallas_src>
import functools

import jax
import jax.numpy as jnp
from jax import lax
from jax.experimental import pallas as pl
from jax.experimental.pallas import tpu as pltpu

_LANE = 128
_SUBLANE = 8
_UNROLL_MAX = 4


def _round_up(x, m):
    return (x + m - 1) // m * m


def _tpu_vmem_and_multicore():
    """Best-effort (vmem_capacity_bytes, has_multiple_tensorcores).

    Falls back to v7x-safe numbers (64 MiB, multi-TC) if the query fails, so a
    wrong guess can only cost a little performance, never a VMEM overrun.
    """
    vmem = 64 << 20
    try:
        info = pltpu.get_tpu_info()
        v = getattr(info, "vmem_capacity_bytes", None)
        if v:
            vmem = int(v)
    except Exception:
        pass
    vmem = max(64 << 20, min(int(vmem), 128 << 20))

    multi_tc = True  # conservative default: keeps >=2 parallel grid steps
    try:
        kind = jax.devices()[0].device_kind.lower()
        single_tc_kinds = ("v2", "v3", "v5e", "v5 lite", "v5lite",
                           "v6e", "v6 lite", "v6lite")
        if any(t in kind for t in single_tc_kinds):
            multi_tc = False
    except Exception:
        pass
    return vmem, multi_tc


def _vmem_bytes(gb, s_blk, C, NC, x_item, w_item, out_item):
    """Pessimistic VMEM footprint of the whole pipeline for (gb, s_blk)."""
    c8, c128 = _round_up(C, _SUBLANE), _round_up(C, _LANE)
    nc8, nc128 = _round_up(NC, _SUBLANE), _round_up(NC, _LANE)
    s128 = _round_up(s_blk, _LANE)
    x_bufs = 2 * gb * c8 * s128 * x_item            # double-buffered x blocks
    w_bufs = 2 * nc8 * c128 * w_item                # weight (constant index)
    out_bufs = 2 * _round_up(gb, _SUBLANE) * nc128 * out_item
    acc = 4 * gb * nc8 * _LANE * 4                  # f32 scratch accumulators
    live = gb if gb <= _UNROLL_MAX else 1           # unrolled iters stay live
    inter = live * 3 * nc8 * s128 * 4               # score, e, score*e (f32)
    return x_bufs + w_bufs + out_bufs + acc + inter


def _choose_tiling(B, C, S, NC, x_item, w_item, out_item, budget, min_steps):
    # 1) Whole-S blocks, largest batch tile that fits: fewest grid steps ->
    #    least per-step overhead on this HBM-bound kernel.
    for gb in range(B, 0, -1):
        if B % gb:
            continue
        if B >= min_steps and B // gb < min_steps:
            continue
        if _vmem_bytes(gb, S, C, NC, x_item, w_item, out_item) <= budget:
            return gb, S
    # 2) A single batch element does not fit: tile the spatial axis (multiples
    #    of 128 that divide S) and reduce online over the second grid axis.
    for s_blk in range((S // _LANE) * _LANE, 0, -_LANE):
        if S % s_blk:
            continue
        if _vmem_bytes(1, s_blk, C, NC, x_item, w_item, out_item) <= budget:
            return 1, s_blk
    raise ValueError(
        "CSRAHead Pallas kernel: feature map does not fit in VMEM "
        f"(C={C}, S={S}, NC={NC}); no spatial tile that is a multiple of 128 "
        f"and divides S fits the ~{budget >> 20} MiB pipeline budget.")


def _csra_kernel(x_ref, w_ref, o_ref, sum_sc, m_sc, num_sc, den_sc,
                 *, T, lam, inv_s, unroll):
    # x_ref : (GB, C, S_blk)  activations, channels on sublanes, spatial on lanes
    # w_ref : (NC, C)         L2-normalized 1x1-conv weight
    # o_ref : (GB, NC)        logits for this batch tile (lane-dense)
    # *_sc  : (GB, NC, 1) f32 running accumulators (persist across the
    #                         "arbitrary" spatial grid axis)
    s_idx = pl.program_id(1)
    n_s = pl.num_programs(1)
    nb = x_ref.shape[0]

    w = w_ref[...]                                            # (NC, C), hoisted

    @pl.when(s_idx == 0)
    def _init():
        sum_sc[...] = jnp.zeros(sum_sc.shape, sum_sc.dtype)
        m_sc[...] = jnp.full(m_sc.shape, -jnp.inf, m_sc.dtype)
        if T != 99:
            num_sc[...] = jnp.zeros(num_sc.shape, num_sc.dtype)
            den_sc[...] = jnp.zeros(den_sc.shape, den_sc.dtype)

    def body(i, carry):
        x = x_ref[i]                                          # (C, S_blk)
        # 1x1 conv on the MXU with f32 accumulation: (NC, C) @ (C, S_blk).
        score = jnp.dot(w, x, preferred_element_type=jnp.float32)
        sum_sc[i] = sum_sc[i] + jnp.sum(score, axis=1, keepdims=True)
        if T == 99:
            m_sc[i] = jnp.maximum(m_sc[i],
                                  jnp.max(score, axis=1, keepdims=True))
        else:
            # Online softmax-weighted sum (never materializes the softmax):
            # att = sum(score * e) / sum(e), e = exp(T*score - running_max).
            z = score * T
            m_prev = m_sc[i]
            m_new = jnp.maximum(m_prev, jnp.max(z, axis=1, keepdims=True))
            alpha = jnp.exp(m_prev - m_new)                   # 0 on first chunk
            e = jnp.exp(z - m_new)
            num_sc[i] = alpha * num_sc[i] + jnp.sum(score * e, axis=1,
                                                    keepdims=True)
            den_sc[i] = alpha * den_sc[i] + jnp.sum(e, axis=1, keepdims=True)
            m_sc[i] = m_new
        return carry

    lax.fori_loop(0, nb, body, 0, unroll=unroll)

    @pl.when(s_idx == n_s - 1)
    def _finalize():
        base = sum_sc[...] * inv_s                            # (GB, NC, 1)
        if T == 99:
            att = m_sc[...]
        else:
            att = num_sc[...] / den_sc[...]                   # tiny exact divide
        out = base + lam * att                                # (GB, NC, 1)
        o_ref[...] = jnp.reshape(out, o_ref.shape).astype(o_ref.dtype)


def csra_head_pallas(x_nchw, conv_weight, T, lam, *,
                     batch_tile=None, s_tile=None, vmem_limit_bytes=None):
    """CSRA head forward. x_nchw: [B, C, H, W]; conv_weight: [NC, C, 1, 1]."""
    if isinstance(x_nchw, (tuple, list)):     # parity with the PyTorch forward
        x_nchw = x_nchw[-1]

    B, C, H, W = x_nchw.shape
    NC = conv_weight.shape[0]
    S = H * W

    # NCHW is already [B, C, H*W]-contiguous: a free reshape (no transpose),
    # so the memory-bound input is read from HBM once in its native layout.
    x_bcs = x_nchw.reshape(B, C, S)

    # Fold the per-class L2 normalization into the weight at trace time and
    # keep the weight in the activation dtype (bf16 stays bf16 end-to-end; the
    # MXU accumulates in f32 via preferred_element_type).
    w = conv_weight.reshape(NC, C).astype(jnp.float32)
    w = w / jnp.sqrt(jnp.sum(w * w, axis=1, keepdims=True))
    w = w.astype(x_nchw.dtype)

    x_item = jnp.dtype(x_nchw.dtype).itemsize
    w_item = out_item = x_item

    vmem_cap, multi_tc = _tpu_vmem_and_multicore()
    budget = int(vmem_cap * 0.6)
    if vmem_limit_bytes is None:
        vmem_limit_bytes = max(32 << 20,
                               min(vmem_cap - (8 << 20), budget + (16 << 20)))

    min_steps = 2 if multi_tc else 1          # only multi-TC chips benefit
    if batch_tile is None or s_tile is None:
        auto_bt, auto_st = _choose_tiling(B, C, S, NC, x_item, w_item,
                                          out_item, budget, min_steps)
        if batch_tile is None:
            batch_tile = auto_bt
        if s_tile is None:
            s_tile = auto_st if batch_tile == auto_bt else S

    assert B % batch_tile == 0, "batch_tile must divide B"
    assert S % s_tile == 0, "s_tile must divide H*W"
    assert s_tile == S or s_tile % _LANE == 0, \
        "s_tile must be a multiple of 128 (or the full spatial size)"

    num_b = B // batch_tile
    num_s = S // s_tile

    kernel = functools.partial(
        _csra_kernel, T=T, lam=float(lam), inv_s=1.0 / S,
        unroll=(batch_tile <= _UNROLL_MAX))

    out = pl.pallas_call(
        kernel,
        out_shape=jax.ShapeDtypeStruct((num_b, batch_tile, NC), x_nchw.dtype),
        grid_spec=pltpu.PrefetchScalarGridSpec(
            num_scalar_prefetch=0,
            grid=(num_b, num_s),
            in_specs=[
                pl.BlockSpec((batch_tile, C, s_tile), lambda b, s: (b, 0, s)),
                # Constant block index: the pipeline only DMAs the weight once.
                # (The VMEM budget above still accounts for its 2 buffers.)
                pl.BlockSpec((NC, C), lambda b, s: (0, 0)),
            ],
            out_specs=pl.BlockSpec((None, batch_tile, NC),
                                   lambda b, s: (b, 0, 0)),
            scratch_shapes=[pltpu.VMEM((batch_tile, NC, 1), jnp.float32)
                            for _ in range(4)],
        ),
        compiler_params=pltpu.CompilerParams(
            dimension_semantics=("parallel", "arbitrary"),
            vmem_limit_bytes=int(vmem_limit_bytes)),
    )(x_bcs, w)

    return out.reshape(B, NC)


def csra_head_ref(x_nchw, conv_weight, T, lam):
    """Pure-JAX reference (mirrors the PyTorch module)."""
    B, C, H, W = x_nchw.shape
    NC = conv_weight.shape[0]
    w = conv_weight.reshape(NC, C)
    score = jnp.einsum("bchw,nc->bnhw", x_nchw, w)
    norm = jnp.sqrt(jnp.sum(w * w, axis=1))                    # (NC,)
    score = score / norm[None, :, None, None]
    score = score.reshape(B, NC, H * W)
    base_logit = jnp.mean(score, axis=2)
    if T == 99:
        att_logit = jnp.max(score, axis=2)
    else:
        score_soft = jax.nn.softmax(score * T, axis=2)
        att_logit = jnp.sum(score * score_soft, axis=2)
    return base_logit + lam * att_logit


if __name__ == "__main__":
    input_dim = 4
    num_classes = 16
    lam = 0.1

    key = jax.random.PRNGKey(0)
    kx, kw, kx2 = jax.random.split(key, 3)

    B, H, W = 2, 16, 16
    x = jax.random.normal(kx, (B, input_dim, H, W), dtype=jnp.float32)
    conv_weight = jax.random.normal(kw, (num_classes, input_dim, 1, 1),
                                    dtype=jnp.float32) * 0.1

    def check(out, ref, atol, rtol, name):
        out = jax.block_until_ready(out)
        ok = jnp.allclose(jnp.asarray(out, jnp.float32),
                          jnp.asarray(ref, jnp.float32), atol=atol, rtol=rtol)
        assert bool(ok), (name, out, ref)

    # 1) Soft-attention path (T != 99), auto tiling (whole-S block).
    T = 1.0
    check(csra_head_pallas(x, conv_weight, T, lam),
          csra_head_ref(x, conv_weight, T, lam), 1e-4, 1e-4, "soft/auto")

    # 2) Max-pooling path (T == 99), auto tiling.
    check(csra_head_pallas(x, conv_weight, 99, lam),
          csra_head_ref(x, conv_weight, 99, lam), 1e-4, 1e-4, "max/auto")

    # 3) Force the S-tiled online-reduction path (s_tile < S).
    check(csra_head_pallas(x, conv_weight, T, lam, batch_tile=1, s_tile=128),
          csra_head_ref(x, conv_weight, T, lam), 1e-4, 1e-4, "soft/s-tiled")
    check(csra_head_pallas(x, conv_weight, 99, lam, batch_tile=1, s_tile=128),
          csra_head_ref(x, conv_weight, 99, lam), 1e-4, 1e-4, "max/s-tiled")

    # 4) Non-lane-aligned spatial size (ResNet-style 7x7 -> S=49): exercises
    #    pad-lane masking of the sum/max reductions.
    x7 = jax.random.normal(kx2, (B, input_dim, 7, 7), dtype=jnp.float32)
    check(csra_head_pallas(x7, conv_weight, T, lam),
          csra_head_ref(x7, conv_weight, T, lam), 1e-4, 1e-4, "soft/S=49")
    check(csra_head_pallas(x7, conv_weight, 99, lam),
          csra_head_ref(x7, conv_weight, 99, lam), 1e-4, 1e-4, "max/S=49")

    # 5) bf16 activations/weights stay bf16 (HBM traffic halved); f32 accum.
    x_bf = x.astype(jnp.bfloat16)
    w_bf = conv_weight.astype(jnp.bfloat16)
    ref_bf = csra_head_ref(x_bf.astype(jnp.float32),
                           w_bf.astype(jnp.float32), T, lam)
    check(csra_head_pallas(x_bf, w_bf, T, lam), ref_bf, 3e-2, 3e-2, "soft/bf16")

    print("KERNEL_OK")
</pallas_src>

<mosaic_0001>
module attributes {stable_mosaic.version = 11 : i64} {
  func.func @_csra_kernel(%arg0: i32, %arg1: i32, %arg2: memref<1x4x256xf32, #tpu.memory_space<vmem>>, %arg3: memref<16x4xf32, #tpu.memory_space<vmem>>, %arg4: memref<1x1x16xf32, #tpu.memory_space<vmem>>, %arg5: memref<1x16x1xf32, #tpu.memory_space<vmem>>, %arg6: memref<1x16x1xf32, #tpu.memory_space<vmem>>, %arg7: memref<1x16x1xf32, #tpu.memory_space<vmem>>, %arg8: memref<1x16x1xf32, #tpu.memory_space<vmem>>) attributes {dimension_semantics = [#tpu.dimension_semantics<parallel>, #tpu.dimension_semantics<arbitrary>], iteration_bounds = array<i64: 2, 1>, scalar_prefetch = 0 : i64, scratch_operands = 4 : i64, tpu.core_type = #tpu.core_type<tc>, window_params = [{transform_indices = @transform_0, window_bounds = array<i64: 1, 4, 256>}, {pipeline_mode = #tpu.pipeline_mode<synchronous>, transform_indices = @transform_1, window_bounds = array<i64: 16, 4>}, {transform_indices = @transform_2, window_bounds = array<i64: 1, 1, 16>}]} {
    %c0 = arith.constant 0 : index
    %c0_0 = arith.constant 0 : index
    %0 = vector.load %arg3[%c0, %c0_0] : memref<16x4xf32, #tpu.memory_space<vmem>>, vector<16x4xf32>
    %c0_i32 = arith.constant 0 : i32
    %1 = arith.cmpi eq, %arg1, %c0_i32 : i32
    %2 = arith.extui %1 : i1 to i32
    %c0_i32_1 = arith.constant 0 : i32
    %3 = arith.cmpi ne, %2, %c0_i32_1 : i32
    scf.if %3 {
      %cst_28 = arith.constant 0.000000e+00 : f32
      %61 = vector.broadcast %cst_28 : f32 to vector<1x16x1xf32>
      %c0_29 = arith.constant 0 : index
      %c0_30 = arith.constant 0 : index
      %c0_31 = arith.constant 0 : index
      %62 = vector.load %arg5[%c0_29, %c0_30, %c0_31] : memref<1x16x1xf32, #tpu.memory_space<vmem>>, vector<1x16x1xf32>
      tpu.vector_store %arg5[%c0_29, %c0_30, %c0_31], %61 {strides = array<i32>} : memref<1x16x1xf32, #tpu.memory_space<vmem>>, vector<1x16x1xf32>,
      %cst_32 = arith.constant 0xFF800000 : f32
      %63 = vector.broadcast %cst_32 : f32 to vector<1x16x1xf32>
      %c0_33 = arith.constant 0 : index
      %c0_34 = arith.constant 0 : index
      %c0_35 = arith.constant 0 : index
      %64 = vector.load %arg6[%c0_33, %c0_34, %c0_35] : memref<1x16x1xf32, #tpu.memory_space<vmem>>, vector<1x16x1xf32>
      tpu.vector_store %arg6[%c0_33, %c0_34, %c0_35], %63 {strides = array<i32>} : memref<1x16x1xf32, #tpu.memory_space<vmem>>, vector<1x16x1xf32>,
      %cst_36 = arith.constant 0.000000e+00 : f32
      %65 = vector.broadcast %cst_36 : f32 to vector<1x16x1xf32>
      %c0_37 = arith.constant 0 : index
      %c0_38 = arith.constant 0 : index
      %c0_39 = arith.constant 0 : index
      %66 = vector.load %arg7[%c0_37, %c0_38, %c0_39] : memref<1x16x1xf32, #tpu.memory_space<vmem>>, vector<1x16x1xf32>
      tpu.vector_store %arg7[%c0_37, %c0_38, %c0_39], %65 {strides = array<i32>} : memref<1x16x1xf32, #tpu.memory_space<vmem>>, vector<1x16x1xf32>,
      %cst_40 = arith.constant 0.000000e+00 : f32
      %67 = vector.broadcast %cst_40 : f32 to vector<1x16x1xf32>
      %c0_41 = arith.constant 0 : index
      %c0_42 = arith.constant 0 : index
      %c0_43 = arith.constant 0 : index
      %68 = vector.load %arg8[%c0_41, %c0_42, %c0_43] : memref<1x16x1xf32, #tpu.memory_space<vmem>>, vector<1x16x1xf32>
      tpu.vector_store %arg8[%c0_41, %c0_42, %c0_43], %67 {strides = array<i32>} : memref<1x16x1xf32, #tpu.memory_space<vmem>>, vector<1x16x1xf32>,
    } else {
    }
    %c0_i32_2 = arith.constant 0 : i32
    %4 = arith.index_cast %c0_i32_2 : i32 to index
    %c0_3 = arith.constant 0 : index
    %c0_4 = arith.constant 0 : index
    %5 = vector.load %arg2[%4, %c0_3, %c0_4] : memref<1x4x256xf32, #tpu.memory_space<vmem>>, vector<1x4x256xf32>
    %6 = vector.shape_cast %5 : vector<1x4x256xf32> to vector<4x256xf32>
    %cst = arith.constant dense<0.000000e+00> : vector<16x256xf32>
    %7 = tpu.matmul %0, %6, %cst {dimension_numbers = #tpu.dot_dimension_numbers<[1], [0], [0], [1], [0, 0, 1, 1], [], []>} : vector<16x4xf32>, vector<4x256xf32>, vector<16x256xf32> -> vector<16x256xf32>
    %8 = arith.index_cast %c0_i32_2 : i32 to index
    %c0_5 = arith.constant 0 : index
    %c0_6 = arith.constant 0 : index
    %9 = vector.load %arg5[%8, %c0_5, %c0_6] : memref<1x16x1xf32, #tpu.memory_space<vmem>>, vector<1x16x1xf32>
    %10 = vector.shape_cast %9 : vector<1x16x1xf32> to vector<16x1xf32>
    %cst_7 = arith.constant dense<0.000000e+00> : vector<16xf32>
    %11 = vector.multi_reduction <add>, %7, %cst_7 [1] : vector<16x256xf32> to vector<16xf32>
    %12 = vector.shape_cast %11 : vector<16xf32> to vector<16x1xf32>
    %13 = arith.addf %10, %12 : vector<16x1xf32>
    %14 = arith.index_cast %c0_i32_2 : i32 to index
    %c0_8 = arith.constant 0 : index
    %c0_9 = arith.constant 0 : index
    %15 = vector.load %arg5[%14, %c0_8, %c0_9] : memref<1x16x1xf32, #tpu.memory_space<vmem>>, vector<1x16x1xf32>
    %16 = vector.shape_cast %15 : vector<1x16x1xf32> to vector<16x1xf32>
    %17 = vector.shape_cast %13 : vector<16x1xf32> to vector<1x16x1xf32>
    tpu.vector_store %arg5[%14, %c0_8, %c0_9], %17 {strides = array<i32>} : memref<1x16x1xf32, #tpu.memory_space<vmem>>, vector<1x16x1xf32>,
    %cst_10 = arith.constant 1.000000e+00 : f32
    %18 = vector.broadcast %cst_10 : f32 to vector<16x256xf32>
    %19 = arith.mulf %7, %18 : vector<16x256xf32>
    %20 = arith.index_cast %c0_i32_2 : i32 to index
    %c0_11 = arith.constant 0 : index
    %c0_12 = arith.constant 0 : index
    %21 = vector.load %arg6[%20, %c0_11, %c0_12] : memref<1x16x1xf32, #tpu.memory_space<vmem>>, vector<1x16x1xf32>
    %22 = vector.shape_cast %21 : vector<1x16x1xf32> to vector<16x1xf32>
    %cst_13 = arith.constant dense<0xFF800000> : vector<16xf32>
    %23 = vector.multi_reduction <maximumf>, %19, %cst_13 [1] : vector<16x256xf32> to vector<16xf32>
    %24 = vector.shape_cast %23 : vector<16xf32> to vector<16x1xf32>
    %25 = arith.maximumf %22, %24 : vector<16x1xf32>
    %26 = arith.subf %22, %25 : vector<16x1xf32>
    %27 = math.exp %26 : vector<16x1xf32>
    %28 = vector.broadcast %25 : vector<16x1xf32> to vector<16x256xf32>
    %29 = arith.subf %19, %28 : vector<16x256xf32>
    %30 = math.exp %29 : vector<16x256xf32>
    %31 = arith.index_cast %c0_i32_2 : i32 to index
    %c0_14 = arith.constant 0 : index
    %c0_15 = arith.constant 0 : index
    %32 = vector.load %arg7[%31, %c0_14, %c0_15] : memref<1x16x1xf32, #tpu.memory_space<vmem>>, vector<1x16x1xf32>
    %33 = vector.shape_cast %32 : vector<1x16x1xf32> to vector<16x1xf32>
    %34 = arith.mulf %27, %33 : vector<16x1xf32>
    %35 = arith.mulf %7, %30 : vector<16x256xf32>
    %cst_16 = arith.constant dense<0.000000e+00> : vector<16xf32>
    %36 = vector.multi_reduction <add>, %35, %cst_16 [1] : vector<16x256xf32> to vector<16xf32>
    %37 = vector.shape_cast %36 : vector<16xf32> to vector<16x1xf32>
    %38 = arith.addf %34, %37 : vector<16x1xf32>
    %39 = arith.index_cast %c0_i32_2 : i32 to index
    %c0_17 = arith.constant 0 : index
    %c0_18 = arith.constant 0 : index
    %40 = vector.load %arg7[%39, %c0_17, %c0_18] : memref<1x16x1xf32, #tpu.memory_space<vmem>>, vector<1x16x1xf32>
    %41 = vector.shape_cast %40 : vector<1x16x1xf32> to vector<16x1xf32>
    %42 = vector.shape_cast %38 : vector<16x1xf32> to vector<1x16x1xf32>
    tpu.vector_store %arg7[%39, %c0_17, %c0_18], %42 {strides = array<i32>} : memref<1x16x1xf32, #tpu.memory_space<vmem>>, vector<1x16x1xf32>,
    %43 = arith.index_cast %c0_i32_2 : i32 to index
    %c0_19 = arith.constant 0 : index
    %c0_20 = arith.constant 0 : index
    %44 = vector.load %arg8[%43, %c0_19, %c0_20] : memref<1x16x1xf32, #tpu.memory_space<vmem>>, vector<1x16x1xf32>
    %45 = vector.shape_cast %44 : vector<1x16x1xf32> to vector<16x1xf32>
    %46 = arith.mulf %27, %45 : vector<16x1xf32>
    %cst_21 = arith.constant dense<0.000000e+00> : vector<16xf32>
    %47 = vector.multi_reduction <add>, %30, %cst_21 [1] : vector<16x256xf32> to vector<16xf32>
    %48 = vector.shape_cast %47 : vector<16xf32> to vector<16x1xf32>
    %49 = arith.addf %46, %48 : vector<16x1xf32>
    %50 = arith.index_cast %c0_i32_2 : i32 to index
    %c0_22 = arith.constant 0 : index
    %c0_23 = arith.constant 0 : index
    %51 = vector.load %arg8[%50, %c0_22, %c0_23] : memref<1x16x1xf32, #tpu.memory_space<vmem>>, vector<1x16x1xf32>
    %52 = vector.shape_cast %51 : vector<1x16x1xf32> to vector<16x1xf32>
    %53 = vector.shape_cast %49 : vector<16x1xf32> to vector<1x16x1xf32>
    tpu.vector_store %arg8[%50, %c0_22, %c0_23], %53 {strides = array<i32>} : memref<1x16x1xf32, #tpu.memory_space<vmem>>, vector<1x16x1xf32>,
    %54 = arith.index_cast %c0_i32_2 : i32 to index
    %c0_24 = arith.constant 0 : index
    %c0_25 = arith.constant 0 : index
    %55 = vector.load %arg6[%54, %c0_24, %c0_25] : memref<1x16x1xf32, #tpu.memory_space<vmem>>, vector<1x16x1xf32>
    %56 = vector.shape_cast %55 : vector<1x16x1xf32> to vector<16x1xf32>
    %57 = vector.shape_cast %25 : vector<16x1xf32> to vector<1x16x1xf32>
    tpu.vector_store %arg6[%54, %c0_24, %c0_25], %57 {strides = array<i32>} : memref<1x16x1xf32, #tpu.memory_space<vmem>>, vector<1x16x1xf32>,
    %c1_i32 = arith.constant 1 : i32
    %c0_i32_26 = arith.constant 0 : i32
    %58 = arith.cmpi eq, %arg1, %c0_i32_26 : i32
    %59 = arith.extui %58 : i1 to i32
    %c0_i32_27 = arith.constant 0 : i32
    %60 = arith.cmpi ne, %59, %c0_i32_27 : i32
    scf.if %60 {
      %c0_28 = arith.constant 0 : index
      %c0_29 = arith.constant 0 : index
      %c0_30 = arith.constant 0 : index
      %61 = vector.load %arg5[%c0_28, %c0_29, %c0_30] : memref<1x16x1xf32, #tpu.memory_space<vmem>>, vector<1x16x1xf32>
      %cst_31 = arith.constant 3.906250e-03 : f32
      %62 = vector.broadcast %cst_31 : f32 to vector<1x16x1xf32>
      %63 = arith.mulf %61, %62 : vector<1x16x1xf32>
      %c0_32 = arith.constant 0 : index
      %c0_33 = arith.constant 0 : index
      %c0_34 = arith.constant 0 : index
      %64 = vector.load %arg7[%c0_32, %c0_33, %c0_34] : memref<1x16x1xf32, #tpu.memory_space<vmem>>, vector<1x16x1xf32>
      %c0_35 = arith.constant 0 : index
      %c0_36 = arith.constant 0 : index
      %c0_37 = arith.constant 0 : index
      %65 = vector.load %arg8[%c0_35, %c0_36, %c0_37] : memref<1x16x1xf32, #tpu.memory_space<vmem>>, vector<1x16x1xf32>
      %66 = arith.divf %64, %65 : vector<1x16x1xf32>
      %cst_38 = arith.constant 1.000000e-01 : f32
      %67 = vector.broadcast %cst_38 : f32 to vector<1x16x1xf32>
      %68 = arith.mulf %67, %66 : vector<1x16x1xf32>
      %69 = arith.addf %63, %68 : vector<1x16x1xf32>
      %70 = vector.shape_cast %69 : vector<1x16x1xf32> to vector<1x16xf32>
      %c0_39 = arith.constant 0 : index
      %c0_40 = arith.constant 0 : index
      %c0_41 = arith.constant 0 : index
      %71 = vector.load %arg4[%c0_39, %c0_40, %c0_41] : memref<1x1x16xf32, #tpu.memory_space<vmem>>, vector<1x1x16xf32>
      %72 = vector.shape_cast %71 : vector<1x1x16xf32> to vector<1x16xf32>
      %73 = vector.shape_cast %70 : vector<1x16xf32> to vector<1x1x16xf32>
      tpu.vector_store %arg4[%c0_39, %c0_40, %c0_41], %73 {strides = array<i32>} : memref<1x1x16xf32, #tpu.memory_space<vmem>>, vector<1x1x16xf32>,
    } else {
    }
    return
  }
  func.func @transform_0(%arg0: i32, %arg1: i32) -> (i32, i32, i32) {
    %c0_i32 = arith.constant 0 : i32
    %c0_i32_0 = arith.constant 0 : i32
    return %arg0, %c0_i32, %arg1 : i32, i32, i32
  }
  func.func @transform_1(%arg0: i32, %arg1: i32) -> (i32, i32) {
    %c0_i32 = arith.constant 0 : i32
    %c0_i32_0 = arith.constant 0 : i32
    %c0_i32_1 = arith.constant 0 : i32
    return %c0_i32, %c0_i32_0 : i32, i32
  }
  func.func @transform_2(%arg0: i32, %arg1: i32) -> (i32, i32, i32) {
    %c0_i32 = arith.constant 0 : i32
    %c0_i32_0 = arith.constant 0 : i32
    %c0_i32_1 = arith.constant 0 : i32
    return %arg0, %c0_i32, %c0_i32_0 : i32, i32, i32
  }
}

</mosaic_0001>

<bundles_post_ra>
// kernel: tpu_custom_call.1
= control target key start
LH: loop header
LB: loop body
LE: loop exit
PB: predicated region body
PF: predicated region fallthrough
CT: control target
= control target key end

     0   :  { %7 = vsyncpa [#allocation7], 0  ;;  %s813_s0 = inlined_call_operand.vmem [shape: f32[2,4,256], index: 0, kind: input, shape index: {}]   ;;  %s814_s1 = inlined_call_operand.vmem [shape: f32[16,4], index: 1, kind: input, shape index: {}]   ;;  %s815_s2 = inlined_call_operand.hbm [shape: f32[2,1,16], index: 2, kind: output, shape index: {}]  }
   0x1   :  { %9 = vsyncpa [#allocation7 + $0x1], 0  ;;  %s679_s9 = smov 0   ;;  %s681_s10 = smov 0  }
   0x2   :  { %s683_s11 = smov 0   ;;  %s685_s12 = smov 0  }
   0x3   :  { %s687_s13 = smov 0   ;;  %s689_s14 = smov 0  }
   0x4 LB: > { %s486_s15 = sadd.s32 4294967295, %s658_s14   ;;  %s487_s16 = sadd.s32 4294967294, %s658_s14   ;;  %s658_s14 = sphi %s689_s14, %s15_s14   ;;  %s654_s13 = sphi %s687_s13, %s822_s13   ;;  %s650_s12 = sphi %s685_s12, %s821_s12   ;;  %s646_s11 = sphi %s683_s11, %s820_s11   ;;  %s642_s10 = sphi %s681_s10, %s819_s10   ;;  %s638_s9 = sphi %s679_s9, %s818_s9  }
   0x5   : > { %s27_s17 = sadd.s32 1, %s654_s13  ;;  %s83_s18 = sadd.s32 1, %s646_s11 }
   0x6   : > { %p29_p0 = scmp.ge.s32.totalorder %s27_s17, 2  ;;  %p93_p1 = scmp.ne.s32.totalorder %s646_s11, %s642_s10 }
   0x7   : > { %p94_p2 = scmp.eq.s32.totalorder %s486_s15, 1  ;;  %p99_p3 = scmp.ne.s32.totalorder %s642_s10, %s638_s9 }
   0x8   : > { %s824_s17 = smov (%p29_p0, %s27_s17), 0  ;;  %p100_p5 = scmp.eq.s32.totalorder %s487_s16, 1 }
   0x9   : > { %p719_p4 = por %p94_p2, %p93_p1  ;;  %s80_s20 = ssub.s32 %s654_s13, %s824_s17 }
   0xa   : > { %p490_p6 = scmp.ge.s32.totalorder %s658_s14, 1  ;;  %p81_p7 = scmp.eq.s32.totalorder %s80_s20, 0 }
   0xb   : > { %p726_p8 = por %p100_p5, %p99_p3  ;;  %p134_p9 = scmp.lt.s32.totalorder %s658_s14, 3 }
   0xc   : > { %s732_s22 = scalar_select %p81_p7, %s646_s11, %s83_s18  }
   0xd   : > { %p135_p10 = pnand %p490_p6, %p134_p9 }
   0xe   : > { %p160_p11 = scmp.lt.s32.totalorder (!%p135_p10), %s650_s12, 1  ;;  %v660_v0 = vmov (!%p135_p10), 0.0   ;;  %vm194_vm0 = vcmask (!%p135_p10), 1043456   ;;  %v169_v3 = vld [vmem:[%s814_s1] sm:$0xff] (!%p135_p10)  ;;  %vm187_vm1 = vcmask (!%p135_p10), 31744   ;;  %v170_v4 = vld [vmem:[%s814_s1 + $0x8] sm:$0xff] (!%p135_p10) }
   0xf   : > { %138 = sbr.rel (%p135_p10) target bundleno = 854 (0x356), region = 28  ;;  %263 = vmatprep.mubr.f32.mxu0 (!%p135_p10), %v660_v0  ;;  %269 = vmatprep.mubr.f32.mxu1 (!%p135_p10), %v660_v0  ;;  %vm175_vm2 = vcmask (!%p135_p10), 7168   ;;  %v661_v5 = vmov (!%p135_p10), -inf   ;;  %v662_v14 = vmov (!%p135_p10), 0   ;;  %s157_s4 = sand.u32 (!%p135_p10), 1, %s642_s10   ;;  %vm399_vm3 = vcmask (!%p135_p10), 130112  }
  0x10   : > { %178 = vst.msk [vmem:[#allocation3] sm:$0xff] (!%p135_p10), %vm175_vm2, %v661_v5  ;;  %176 = vst.msk [vmem:[#allocation2] sm:$0xff] (!%p135_p10), %vm175_vm2, %v660_v0  ;;  %561 = vset.pattern.permute.xlu1 (!%p135_p10), %v662_v14  ;;  %562 = vset.pattern.permute.xlu0 (!%p135_p10), %v662_v14  ;;  %s497_s5 = sshll.u32 (!%p135_p10), %s650_s12, 4  ;;  %s158_s6 = scalar_lea.vmem (!%p135_p10), [#allocation6], %s157_s4  ;;  %vm402_vm4 = vcmask (!%p135_p10), 122880  }
  0x11   : > { %177 = vst.msk [vmem:[#allocation2 + $0x8] sm:$0xff] (!%p135_p10), %vm175_vm2, %v660_v0  ;;  %179 = vst.msk [vmem:[#allocation3 + $0x8] sm:$0xff] (!%p135_p10), %vm175_vm2, %v661_v5  ;;  %s417_s7 = sshll.u32 (!%p135_p10), %s158_s6, 4  ;;  %s766_s16 = scalar_lea.hbm (!%p135_p10), %s815_s2, %s497_s5  ;;  %s768_s7 = int_to_ptr.vmem [resolvable:$true] %s417_s7 }
  0x12   : > { %180 = vst.msk [vmem:[#allocation4] sm:$0xff] (!%p135_p10), %vm175_vm2, %v660_v0  ;;  %181 = vst.msk [vmem:[#allocation4 + $0x8] sm:$0xff] (!%p135_p10), %vm175_vm2, %v660_v0  ;;  %s580_s18 = scalar_lea.vmem (!%p135_p10), %s768_s7, 16  ;;  %s663_s20 = smov (!%p135_p10), [#allocation6]  }
  0x13   : > { %182 = vst.msk [vmem:[#allocation5] sm:$0xff] (!%p135_p10), %vm175_vm2, %v660_v0  ;;  %183 = vst.msk [vmem:[#allocation5 + $0x8] sm:$0xff] (!%p135_p10), %vm175_vm2, %v660_v0  ;;  %p581_p12 = scmp.ne.s32.totalorder (!%p135_p10), %s768_s7, %s580_s18 }
  0x15   : > { %p582_p13 = pnand (!%p135_p10), %p581_p12, %p719_p4 }
  0x16   : > { %s161_s23 = scalar_select %p160_p11, %s650_s12, 1 }
  0x17   : > { %v289_v15 = vld [vmem:[#allocation3] sm:$0xff]  ;;  %v276_v54 = vld [vmem:[#allocation2] sm:$0xff]  ;;  %s405_s12 = scalar_lea.sflag [#allocation7], %s157_s4  ;;  %p583_p0 = pneg %p582_p13 }
  0x18   : > { %s500_s24 = sshll.u32 %s161_s23, 3  ;;  %v290_v18 = vld [vmem:[#allocation3 + $0x8] sm:$0xff]  ;;  %v277_v5 = vld [vmem:[#allocation2 + $0x8] sm:$0xff]  ;;  %s584_s23 = sshll.u32 %s663_s20, 4  ;;  %s585_s23 = int_to_ptr.vmem [resolvable:$false] %s584_s23 }
  0x19   : > { %s167_s27 = scalar_lea.vmem %s813_s0, %s500_s24  ;;  %v327_v58 = vld [vmem:[#allocation4] sm:$0xff]  ;;  %v328_v63 = vld [vmem:[#allocation4 + $0x8] sm:$0xff]  ;;  %s586_s24 = scalar_lea.vmem %s585_s23, 32 }
  0x1a   : > { %v184_v1 = vld [vmem:[%s167_s27] sm:$0xff]  ;;  %v345_v48 = vld [vmem:[#allocation5] sm:$0xff]  ;;  %v346_v52 = vld [vmem:[#allocation5 + $0x8] sm:$0xff]  ;;  %p587_p1 = scmp.lt.s32.totalorder %s768_s7, %s585_s23  ;;  %p588_p2 = scmp.lt.s32.totalorder %s586_s24, %s580_s18 }
  0x1b   : > { %v186_v2 = vcombine.high %v184_v1, %v184_v1 }
  0x1c   : > { %p589_p3 = por %p588_p2, %p587_p1 }
  0x1d   : > { %493 = vmatprep.subr.msk.mxu0 %vm194_vm0, %v186_v2  ;;  %501 = vmatprep.subr.msk.mxu1 %vm194_vm0, %v186_v2 }
  0x1e   : > { %494 = vmatpush1.msk.msra.mxu0 %vm194_vm0, %v184_v1  ;;  %502 = vmatpush1.msk.msra.mxu1 %vm194_vm0, %v184_v1  ;;  %p590_p5 = pnand %p589_p3, %p583_p0 }
  0x1f   : > { %495 = vmatmul.mubr.msk.f32.vlgmr.msra.gmra.mrb[0].mxu0 %vm187_vm1, %v169_v3  ;;  %496 = vmatmul.mubr.msk.f32.vlgmr.msra.gmra.mrb[0].mxu1 %vm187_vm1, %v170_v4 }
  0xf2   : > { %v265_v6 = vpop.f32.mrb[0].mxu0  ;;  %v271_v7 = vpop.f32.mrb[0].mxu1 }
  0xf3   : > { %v267_v8 = vpop.f32.mrb[1].mxu0  ;;  %v273_v9 = vpop.f32.mrb[1].mxu1 }
  0xf4   : > { %v291_v10 = vmax.f32 %v265_v6, %v267_v8  ;;  %v294_v11 = vmax.f32 %v271_v7, %v273_v9  ;;  %v278_v12 = vadd.f32 %v267_v8, %v265_v6  ;;  %v281_v13 = vadd.f32 %v273_v9, %v271_v7 }
  0xf6   : > { %292 = vmax.xlane.f32.xlu0 %v291_v10 }
  0xfa   : > { %295 = vmax.xlane.f32.xlu0 %v294_v11 }
 0x183   : > { %v293_v16 = vpop.xlane.xlu0 %292 }
 0x184   : > { %v297_v17 = vmax.f32 %v289_v15, %v293_v16 }
 0x186   : > { %v299_v19 = vsub.f32 %v289_v15, %v297_v17  ;;  %359 = vst.msk [vmem:[#allocation3] sm:$0xff] %vm175_vm2, %v297_v17  ;;  %307 = vperm.xlu1 %561, %v297_v17  }
 0x187   : > { %v296_v20 = vpop.xlane.xlu0 %295 }
 0x188   : > { %v298_v21 = vmax.f32 %v290_v18, %v296_v20  ;;  %v301_v45 = vmul.f32 1.442695, %v299_v19 }
 0x18a   : > { %v300_v22 = vsub.f32 %v290_v18, %v298_v21  ;;  %360 = vst.msk [vmem:[#allocation3 + $0x8] sm:$0xff] %vm175_vm2, %v298_v21  ;;  %312 = vperm.xlu1 %561, %v298_v21  }
 0x18c   : > { %v303_v46 = vmul.f32 1.442695, %v300_v22 }
 0x205   : > { %v308_v23 = vpop.permute.xlu1 %307 }
 0x206   : > { %v315_v24 = vsub.f32 %v265_v6, %v308_v23  ;;  %v316_v25 = vsub.f32 %v267_v8, %v308_v23  ;;  %v388_v23 = vlaneseq }
 0x208   : > { %v319_v26 = vmul.f32 1.442695, %v315_v24  ;;  %v321_v27 = vmul.f32 1.442695, %v316_v25  ;;  %v389_v24 = vand.u32 127, %v388_v23  ;;  %v391_v25 = vshrl.u32 %v388_v23, 7 }
 0x209   : > { %v313_v28 = vpop.permute.xlu1 %312 }
 0x20a   : > { %564 = vpow2.f32 %v319_v26  ;;  %v317_v29 = vsub.f32 %v271_v7, %v313_v28  ;;  %v318_v30 = vsub.f32 %v273_v9, %v313_v28  ;;  %v394_v26 = vadd.s32 4294967288, %v389_v24 }
 0x20b   : > { %566 = vpow2.f32 %v321_v27  ;;  %v392_v27 = vsub.s32 %v389_v24, %v391_v25 }
 0x20c   : > { %v323_v31 = vmul.f32 1.442695, %v317_v29  ;;  %v325_v32 = vmul.f32 1.442695, %v318_v30  ;;  %v397_v28 = vsub.s32 %v394_v26, %v391_v25 }
 0x20e   : > { %568 = vpow2.f32 %v323_v31 }
 0x20f   : > { %570 = vpow2.f32 %v325_v32 }
 0x210   : > { %572 = vpow2.f32 %v301_v45 }
 0x211   : > { %574 = vpow2.f32 %v303_v46 }
 0x214   : > { %v565_v33 = vpop.eup %564 }
 0x215   : > { %v567_v34 = vpop.eup %566  ;;  %v331_v35 = vmul.f32 %v565_v33, %v265_v6 }
 0x216   : > { %v349_v36 = vadd.f32 %v567_v34, %v565_v33  ;;  %v332_v37 = vmul.f32 %v567_v34, %v267_v8 }
 0x218   : > { %v569_v38 = vpop.eup %568  ;;  %350 = vadd.xlane.f32.xlu0 %v349_v36  ;;  %v335_v39 = vadd.f32 %v332_v37, %v331_v35 }
 0x219   : > { %v571_v40 = vpop.eup %570  ;;  %v333_v41 = vmul.f32 %v569_v38, %v271_v7 }
 0x21a   : > { %v352_v42 = vadd.f32 %v571_v40, %v569_v38  ;;  %v334_v43 = vmul.f32 %v571_v40, %v273_v9  ;;  %v573_v47 = vpop.eup %572 }
 0x21b   : > { %v347_v49 = vmul.f32 %v573_v47, %v345_v48  ;;  %v575_v50 = vpop.eup %574  ;;  %v329_v61 = vmul.f32 %v573_v47, %v327_v58 }
 0x21c   : > { %353 = vadd.xlane.f32.xlu1 %v352_v42  ;;  %279 = vadd.xlane.f32.xlu0 %v278_v12  ;;  %v338_v44 = vadd.f32 %v334_v43, %v333_v41  ;;  %v348_v55 = vmul.f32 %v575_v50, %v346_v52  ;;  %v330_v2 = vmul.f32 %v575_v50, %v328_v63 }
 0x220   : > { %336 = vadd.xlane.f32.xlu0 %v335_v39 }
 0x224   : > { %339 = vadd.xlane.f32.xlu0 %v338_v44 }
 0x228   : > { %282 = vadd.xlane.f32.xlu0 %v281_v13 }
 0x2a5   : > { %v351_v51 = vpop.xlane.xlu0 %350 }
 0x2a6   : > { %v355_v53 = vadd.f32 %v351_v51, %v347_v49 }
 0x2a8   : > { %357 = vst.msk [vmem:[#allocation5] sm:$0xff] %vm175_vm2, %v355_v53 }
 0x2a9   : > { %v354_v56 = vpop.xlane.xlu1 %353  ;;  %v280_v57 = vpop.xlane.xlu0 %279 }
 0x2aa   : > { %v356_v59 = vadd.f32 %v354_v56, %v348_v55  ;;  %v284_v60 = vadd.f32 %v280_v57, %v276_v54 }
 0x2ac   : > { %358 = vst.msk [vmem:[#allocation5 + $0x8] sm:$0xff] %vm175_vm2, %v356_v59  ;;  %287 = vst.msk [vmem:[#allocation2] sm:$0xff] %vm175_vm2, %v284_v60 }
 0x2ad   : > { %v337_v62 = vpop.xlane.xlu0 %336 }
 0x2ae   : > { %v341_v0 = vadd.f32 %v337_v62, %v329_v61 }
 0x2af   : > { %v370_v1 = vld [vmem:[#allocation5] sm:$0xff] }
 0x2b0   : > { %343 = vst.msk [vmem:[#allocation4] sm:$0xff] %vm175_vm2, %v341_v0  ;;  %576 = vrcp.f32 %v370_v1 }
 0x2b1   : > { %v340_v3 = vpop.xlane.xlu0 %339 }
 0x2b2   : > { %v342_v4 = vadd.f32 %v340_v3, %v330_v2 }
 0x2b3   : > { %v371_v6 = vld [vmem:[#allocation5 + $0x8] sm:$0xff]  ;;  %v364_v10 = vld [vmem:[#allocation2] sm:$0xff] }
 0x2b4   : > { %344 = vst.msk [vmem:[#allocation4 + $0x8] sm:$0xff] %vm175_vm2, %v342_v4  ;;  %578 = vrcp.f32 %v371_v6  ;;  %v366_v13 = vmul.f32 0.00390625, %v364_v10 }
 0x2b5   : > { %v283_v7 = vpop.xlane.xlu0 %282 }
 0x2b6   : > { %v285_v8 = vadd.f32 %v283_v7, %v277_v5 }
 0x2b7   : > { %v368_v11 = vld [vmem:[#allocation4] sm:$0xff] }
 0x2b8   : > { %288 = vst.msk [vmem:[#allocation2 + $0x8] sm:$0xff] %vm175_vm2, %v285_v8 }
 0x2ba   : > { %v577_v9 = vpop.eup %576 }
 0x2bb   : > { %v373_v12 = vmul.f32 %v577_v9, %v368_v11  ;;  %v369_v16 = vld [vmem:[#allocation4 + $0x8] sm:$0xff] }
 0x2bd   : > { %v376_v14 = vmul.f32 0.1, %v373_v12 }
 0x2be   : > { %v579_v15 = vpop.eup %578 }
 0x2bf   : > { %v378_v17 = vadd.f32 %v376_v14, %v366_v13  ;;  %v365_v18 = vld [vmem:[#allocation2 + $0x8] sm:$0xff]  ;;  %v375_v19 = vmul.f32 %v579_v15, %v369_v16 }
 0x2c0   : > { %v367_v20 = vmul.f32 0.00390625, %v365_v18 }
 0x2c1   : > { %383 = vperm.xlu0 %562, %v378_v17   ;;  %v377_v21 = vmul.f32 0.1, %v375_v19 }
 0x2c3   : > { %v379_v22 = vadd.f32 %v377_v21, %v367_v20 }
 0x2c5   : > { %386 = vperm.xlu1 %561, %v379_v22  }
 0x340   : > { %v384_v29 = vpop.permute.xlu0 %383 }
 0x341   : > { %v393_v31 = vrot.slane %v384_v29, %v392_v27 }
 0x344   : > { %v387_v30 = vpop.permute.xlu1 %386 }
 0x345   : > { %v398_v32 = vrot.slane %v387_v30, %v397_v28 }
 0x347   : > { %v400_v33 = vsel %vm399_vm3, %v398_v32, %v393_v31 }
 0x348   : > { %403 = vst.msk [vmem:[%s158_s6] sm:$0x1] %vm402_vm4, %v400_v33 }
 0x349   : > { %593 = shalt.err (!%p590_p5)
}
 0x34a   : > { %s594_s25 = scalar_lea.hbm %s766_s16, 16  ;;  %s598_s28 = scalar_lea.hbm %s815_s2, 32 }
 0x34b   : > { %p595_p6 = scmp.ne.s32.totalorder %s766_s16, %s594_s25  ;;  %p599_p10 = scmp.lt.u32.totalorder %s766_s16, %s815_s2 }
 0x34c   : > { %p600_p11 = scmp.lt.u32.totalorder %s598_s28, %s594_s25  ;;  %p602_p13 = scmp.lt.u32.totalorder %s594_s25, %s766_s16 }
 0x34d   : > { %p596_p7 = pnand %p595_p6, %p719_p4 }
 0x34e   : > { %p601_p12 = por %p600_p11, %p599_p10 }
 0x34f   : > { %p597_p9 = pneg %p596_p7 }
 0x350   : > { %p603_p0 = por %p602_p13, %p601_p12 }
 0x352   : > { %p604_p1 = pnand %p603_p0, %p597_p9 }
 0x354   : > { %607 = shalt.err (!%p604_p1)
}
 0x355   : > { %503 = dma.vmem_to_hbm [thread:$0]  (%p719_p4), %s768_s7, 16, %s766_s16, %s405_s12  }
 0x356 PF: > { %p509_p2 = scmp.ge.s32.totalorder %s658_s14, 2  ;;  %s429_s3 = sand.u32 1, %s638_s9  }
 0x357   : > { %s430_s4 = scalar_lea.sflag [#allocation7], %s429_s3 }
 0x358   : > { %p506_p3 = pnand %p509_p2, %p726_p8 }
 0x35a   : > { %633 = dma.done.wait (!%p506_p3), %s430_s4, 16  }
 0x35b   : > { %635 = vsyncadd (!%p506_p3), %s430_s4, 4294967280  ;;  %s15_s14 = sadd.s32 1, %s658_s14   ;;  %s818_s9 = smov %s642_s10 }
 0x35c   : > { %p12_p5 = scmp.ge.s32.totalorder %s15_s14, 4   ;;  %s819_s10 = smov %s646_s11 }
 0x35d   : > { %s820_s11 = smov %s732_s22  ;;  %s821_s12 = smov %s654_s13 }
 0x35e   : > { %s822_s13 = smov %s824_s17  ;;  %14 = sbr.rel (!%p12_p5) target bundleno = 4 (0x4), region = 71 }
 0x365   :  { %434 = vsyncpa [#allocation7], 1 }
 0x366   :  { %436 = vsyncpa [#allocation7 + $0x1], 1 }

</bundles_post_ra>
